<compile_context>
chip_gen: v6e
topology: v6e:2x2x1
jax: 0.10.0
libtpu: 0.0.40
codegen_flags: <defaults>
</compile_context>

<pallas_src>
import functools

import jax
import jax.numpy as jnp
from jax.experimental import pallas as pl
from jax.experimental.pallas import tpu as pltpu

# Raise Mosaic's scoped-VMEM cap above the 16/32 MiB defaults; the per-step
# working sets below stay <~28 MiB so this is also safe on v7x (64 MiB physical).
_VMEM_LIMIT = 64 << 20


def _sublane_quantum(dtype):
    # Sublane tiling quantum: f32 -> 8, bf16 -> 16, int8/uint8/fp8 -> 32.
    return 8 * max(1, 4 // jnp.dtype(dtype).itemsize)


def _choose_tile(extent, quantum, bytes_per_unit, budget_bytes):
    """Pick a tile along one axis. Returns (tile, padded_extent).

    `bytes_per_unit` = per-step working-set bytes contributed by one unit of
    this axis (already including double-buffering and in-kernel temporaries).
    If `extent` can't be tiled within budget without padding, the axis is
    padded up to a tile multiple instead of silently using one giant block.
    """
    extent = int(extent)
    if extent <= quantum or extent * bytes_per_unit <= budget_bytes:
        return extent, extent                       # single full-extent block
    cap = max(quantum,
              (budget_bytes // max(bytes_per_unit, 1)) // quantum * quantum)
    if extent % quantum == 0:
        tile = min(extent, cap)
        while extent % tile != 0:
            tile -= quantum
        return tile, extent
    tile = cap
    return tile, pl.cdiv(extent, tile) * tile       # pad up to a tile multiple


# ----------------------------------------------------------------------------
# Kernel 1: reduce_embeddings = AdaptiveAvgPool2d(1) + Conv2d(C, E, k=1) + squeeze
#   x      : [B, C, HW]  tiled as (1, C, TILE_HW); grid = (B, HW // TILE_HW)
#   weight : [C, E]  (conv weight [E, C, 1, 1] reshaped/transposed)
#   bias   : [1, E]
#   out    : [B, 1, E] (reshaped to [B, E] by the wrapper)
# ----------------------------------------------------------------------------
def _embed_kernel(x_ref, w_ref, b_ref, o_ref, acc_ref, *, inv_hw):
    k = pl.program_id(1)

    @pl.when(k == 0)
    def _():
        acc_ref[...] = jnp.zeros_like(acc_ref)

    tile = x_ref.shape[2]
    n_full, rem = divmod(tile, 128)

    # Lane-shaped accumulation: fold each aligned 128-lane chunk of this HW
    # tile into the (C, 128) accumulator with aligned vector loads + VPU adds.
    # The single 128->1 cross-lane (XLU) reduce and the [C]->[E] relayout
    # happen only once per batch row, in the finalize below.
    if n_full:
        @pl.loop(0, n_full, unroll=n_full <= 8)
        def _(j):
            off = pl.multiple_of(j * 128, 128)
            acc_ref[...] += x_ref[0, :, pl.ds(off, 128)].astype(jnp.float32)

    if rem:  # only when HW itself isn't a 128-multiple (full-extent block)
        acc_ref[:, :rem] += x_ref[0, :, pl.ds(n_full * 128, rem)].astype(jnp.float32)

    @pl.when(k == pl.num_programs(1) - 1)
    def _():
        pooled = jnp.sum(acc_ref[...], axis=-1, keepdims=True) * inv_hw      # [C, 1]
        w = w_ref[...].astype(jnp.float32)                                   # [C, E]
        # C/E are modest (vision-feature channels -> embedding): a one-time
        # VPU broadcast-MAC per batch row; an MXU dot only pays off for very
        # large C*E.
        out = jnp.sum(pooled * w, axis=0, keepdims=True)                     # [1, E]
        o_ref[0] = (out + b_ref[...].astype(jnp.float32)).astype(o_ref.dtype)


def reduce_embeddings(features_nchw, conv_weight, conv_bias, *, tile_hw=None):
    """features_nchw: [B, C, H, W]; conv_weight: [E, C, 1, 1]; conv_bias: [E].

    Returns the pooled+projected embeddings [B, E] (float32).
    """
    B, C, H, W = features_nchw.shape
    E = conv_weight.shape[0]
    HW = H * W
    x = features_nchw.reshape(B, C, HW)
    w = conv_weight.reshape(E, C).T                                          # [C, E]
    b = conv_bias.reshape(1, E)

    bytes_per_unit = 2 * C * x.dtype.itemsize          # double-buffered input block
    if tile_hw is None:
        tile_hw, hw_pad = _choose_tile(HW, 128, bytes_per_unit,
                                       budget_bytes=28 << 20)
    else:
        assert tile_hw == HW or tile_hw % 128 == 0
        hw_pad = pl.cdiv(HW, tile_hw) * tile_hw
    if hw_pad != HW:
        # Zero padding is sum-neutral; the mean divides by the true HW below.
        x = jnp.pad(x, ((0, 0), (0, 0), (0, hw_pad - HW)))

    kernel = functools.partial(_embed_kernel, inv_hw=1.0 / HW)
    out = pl.pallas_call(
        kernel,
        out_shape=jax.ShapeDtypeStruct((B, 1, E), jnp.float32),
        grid=(B, hw_pad // tile_hw),
        in_specs=[
            pl.BlockSpec((1, C, tile_hw), lambda bi, k: (bi, 0, k)),
            pl.BlockSpec((C, E), lambda bi, k: (0, 0)),
            pl.BlockSpec((1, E), lambda bi, k: (0, 0)),
        ],
        out_specs=pl.BlockSpec((1, 1, E), lambda bi, k: (bi, 0, 0)),
        scratch_shapes=[pltpu.VMEM((C, 128), jnp.float32)],
        compiler_params=pltpu.CompilerParams(
            dimension_semantics=("parallel", "arbitrary"),
            vmem_limit_bytes=_VMEM_LIMIT),
    )(x, w, b)
    return out.reshape(B, E)


# ----------------------------------------------------------------------------
# Kernel 2: _process_sam_output
#   pred       = sigmoid(logits)                          [B, K, H, W]
#   background = clamp(1 - sum_k pred, 0, 1)              [B, 1, H, W]
#   onehot     = onehot(argmax(concat(bg, pred), axis=1)) [B, K+1, H, W]
# Grid = (B, H // TILE_H); one spatial row-tile of one batch element per step.
# ----------------------------------------------------------------------------
def _postprocess_kernel(logits_ref, out_ref, *, num_fg):
    # Channel 0 seeds the running sigmoid-sum and the foreground max. The max
    # is tracked on the sigmoid values already computed for the background sum
    # (no extra EUP pass; tie-break identical to argmax-over-sigmoid).
    s = jax.nn.sigmoid(logits_ref[0, 0].astype(jnp.float32))          # [TH, W]
    total = s
    best_s = s
    best_idx = jnp.zeros(s.shape, dtype=jnp.int32)
    for c in range(1, num_fg):
        sc = jax.nn.sigmoid(logits_ref[0, c].astype(jnp.float32))
        total = total + sc
        better = sc > best_s                      # strict >: earlier channel wins ties
        best_s = jnp.where(better, sc, best_s)
        best_idx = jnp.where(better, jnp.int32(c), best_idx)

    bg = jnp.clip(1.0 - total, 0.0, 1.0)          # [TH, W]
    fg_wins = best_s > bg                         # strict >: background (ch 0) wins ties
    cls = jnp.where(fg_wins, best_idx + 1, 0)     # [TH, W] int32

    # Per-class one-hot written straight to the output ref — no concat, no
    # iota, no (K+1)-channel float temporaries.
    for c in range(num_fg + 1):
        out_ref[0, c] = (cls == c).astype(out_ref.dtype)


def process_sam_output(logits, *, tile_h=None, out_dtype=jnp.uint8):
    """logits: [B, K, H, W] raw SAM mask logits (K = num_classes - 1).

    Returns the one-hot prediction [B, K+1, H, W]. The kernel writes K+1
    channels per pixel but only reads K, so it is writeback-bound: the default
    uint8 output (one-hot values are exactly 0/1, lossless) cuts HBM writeback
    4x vs float32; pass out_dtype=jnp.float32 for the original interface dtype.
    """
    B, K, H, W = logits.shape
    C = K + 1
    out_dtype = jnp.dtype(out_dtype)
    quantum = max(_sublane_quantum(logits.dtype), _sublane_quantum(out_dtype))

    # Per-row working set: double-buffered in/out blocks plus ~8 f32 temporary
    # planes (total / best_s / best_idx / bg / cls / current sigmoid / casts)
    # kept live in the kernel — counted so large tiles stay inside v7x's VMEM.
    bytes_per_row = W * (2 * K * logits.dtype.itemsize
                         + 2 * C * out_dtype.itemsize
                         + 8 * 4)
    if tile_h is None:
        tile_h, h_pad = _choose_tile(H, quantum, bytes_per_row,
                                     budget_bytes=20 << 20)
    else:
        assert tile_h == H or tile_h % quantum == 0
        h_pad = pl.cdiv(H, tile_h) * tile_h
    padded = h_pad != H
    x = jnp.pad(logits, ((0, 0), (0, 0), (0, h_pad - H), (0, 0))) if padded else logits

    # TODO(synk): if SAM masks ever arrive with W not a multiple of 128, flatten
    # (tile_h, W) into a single lane axis (or pad W) to keep stores lane-dense;
    # the module resizes to 256x256, so production W is already 128-aligned.

    kernel = functools.partial(_postprocess_kernel, num_fg=K)
    out = pl.pallas_call(
        kernel,
        out_shape=jax.ShapeDtypeStruct((B, C, h_pad, W), out_dtype),
        grid=(B, h_pad // tile_h),
        in_specs=[pl.BlockSpec((1, K, tile_h, W), lambda b, h: (b, 0, h, 0))],
        out_specs=pl.BlockSpec((1, C, tile_h, W), lambda b, h: (b, 0, h, 0)),
        compiler_params=pltpu.CompilerParams(
            dimension_semantics=("parallel", "parallel"),
            vmem_limit_bytes=_VMEM_LIMIT),
    )(x)
    return out[:, :, :H, :] if padded else out


# ----------------------------------------------------------------------------
# Forward: the SAM2 predictor itself is untranslatable, so the forward consumes
# stand-in predictor logits and runs the post-processing kernel.
# ----------------------------------------------------------------------------
def sam_forward(logits, *, tile_h=None, out_dtype=jnp.uint8):
    # TODO(synk): set_image_batch / PointPromptGenerator / predict_batch omitted.
    return process_sam_output(logits, tile_h=tile_h, out_dtype=out_dtype)


# -------------------------- pure-JAX reference -------------------------------
def _ref_postprocess(logits):
    pred = jax.nn.sigmoid(logits.astype(jnp.float32))
    bg = jnp.clip(1.0 - jnp.sum(pred, axis=1, keepdims=True), 0.0, 1.0)
    full = jnp.concatenate([bg, pred], axis=1)
    idx = jnp.argmax(full, axis=1)
    return jax.nn.one_hot(idx, full.shape[1], axis=1, dtype=jnp.float32)


if __name__ == "__main__":
    key = jax.random.PRNGKey(0)
    k_feat, k_w, k_b, k_logits = jax.random.split(key, 4)

    # Small, module-consistent shapes.
    B, C, Hf, Wf = 2, 4, 16, 16        # "vision_features" (image_size == C channels)
    E = 32                             # embedding_size
    num_classes = 4                    # => K = 3 foreground mask channels
    Hm = Wm = 64                       # small stand-in for the 256x256 SAM masks

    features = jax.random.normal(k_feat, (B, C, Hf, Wf), dtype=jnp.float32)
    conv_w = jax.random.normal(k_w, (E, C, 1, 1), dtype=jnp.float32) * 0.1
    conv_b = jax.random.normal(k_b, (E,), dtype=jnp.float32) * 0.1
    logits = jax.random.normal(k_logits, (B, num_classes - 1, Hm, Wm),
                               dtype=jnp.float32)

    # embed() reduction path — force tile_hw=128 so the pipelined HW reduction
    # takes >1 grid step at this toy size (grid = (B, 2)).
    emb = reduce_embeddings(features, conv_w, conv_b, tile_hw=128)
    jax.block_until_ready(emb)
    emb_ref = jnp.mean(features, axis=(2, 3)) @ conv_w.reshape(E, C).T + conv_b
    assert emb.shape == (B, E)
    assert jnp.allclose(emb, emb_ref, atol=1e-5, rtol=1e-5), "embed mismatch"

    # forward post-processing path — force tile_h=32 (valid for the uint8
    # output's 32-row sublane quantum) so the spatial grid axis has >1 step.
    pred = sam_forward(logits, tile_h=32)            # default uint8 one-hot
    jax.block_until_ready(pred)
    pred_ref = _ref_postprocess(logits)
    assert pred.shape == (B, num_classes, Hm, Wm)
    assert pred.dtype == jnp.uint8
    assert jnp.array_equal(pred.astype(jnp.float32), pred_ref), "postprocess mismatch"

    # Original float32 interface dtype still available.
    pred_f32 = process_sam_output(logits, tile_h=32, out_dtype=jnp.float32)
    jax.block_until_ready(pred_f32)
    assert jnp.array_equal(pred_f32, pred_ref), "postprocess f32 mismatch"

    print("KERNEL_OK")
</pallas_src>

<mosaic_0001>
module attributes {stable_mosaic.version = 11 : i64} {
  func.func @_embed_kernel(%arg0: i32, %arg1: i32, %arg2: memref<1x4x128xf32, #tpu.memory_space<vmem>>, %arg3: memref<4x32xf32, #tpu.memory_space<vmem>>, %arg4: memref<1x32xf32, #tpu.memory_space<vmem>>, %arg5: memref<1x1x32xf32, #tpu.memory_space<vmem>>, %arg6: memref<4x128xf32, #tpu.memory_space<vmem>>) attributes {dimension_semantics = [#tpu.dimension_semantics<parallel>, #tpu.dimension_semantics<arbitrary>], iteration_bounds = array<i64: 2, 2>, scalar_prefetch = 0 : i64, scratch_operands = 1 : i64, tpu.core_type = #tpu.core_type<tc>, window_params = [{transform_indices = @transform_0, window_bounds = array<i64: 1, 4, 128>}, {pipeline_mode = #tpu.pipeline_mode<synchronous>, transform_indices = @transform_1, window_bounds = array<i64: 4, 32>}, {pipeline_mode = #tpu.pipeline_mode<synchronous>, transform_indices = @transform_2, window_bounds = array<i64: 1, 32>}, {transform_indices = @transform_3, window_bounds = array<i64: 1, 1, 32>}]} {
    %c0_i32 = arith.constant 0 : i32
    %0 = arith.cmpi eq, %arg1, %c0_i32 : i32
    %1 = arith.extui %0 : i1 to i32
    %c0_i32_0 = arith.constant 0 : i32
    %2 = arith.cmpi ne, %1, %c0_i32_0 : i32
    scf.if %2 {
      %cst = arith.constant 0.000000e+00 : f32
      %16 = vector.broadcast %cst : f32 to vector<4x128xf32>
      %c0_11 = arith.constant 0 : index
      %c0_12 = arith.constant 0 : index
      %17 = vector.load %arg6[%c0_11, %c0_12] : memref<4x128xf32, #tpu.memory_space<vmem>>, vector<4x128xf32>
      tpu.vector_store %arg6[%c0_11, %c0_12], %16 {strides = array<i32>} : memref<4x128xf32, #tpu.memory_space<vmem>>, vector<4x128xf32>,
    } else {
    }
    %c0_i32_1 = arith.constant 0 : i32
    %c1_i32 = arith.constant 1 : i32
    %3 = arith.muli %c0_i32_1, %c1_i32 : i32
    %c0_i32_2 = arith.constant 0 : i32
    %4 = arith.addi %c0_i32_2, %3 : i32
    %c128_i32 = arith.constant 128 : i32
    %5 = arith.muli %4, %c128_i32 : i32
    %6 = tpu.assume_multiple %5, 128 : i32
    %c0 = arith.constant 0 : index
    %c0_3 = arith.constant 0 : index
    %7 = vector.load %arg6[%c0, %c0_3] : memref<4x128xf32, #tpu.memory_space<vmem>>, vector<4x128xf32>
    %c0_4 = arith.constant 0 : index
    %c0_5 = arith.constant 0 : index
    %8 = arith.index_cast %6 : i32 to index
    %9 = vector.load %arg2[%c0_4, %c0_5, %8] : memref<1x4x128xf32, #tpu.memory_space<vmem>>, vector<1x4x128xf32>
    %10 = vector.shape_cast %9 : vector<1x4x128xf32> to vector<4x128xf32>
    %11 = arith.addf %7, %10 : vector<4x128xf32>
    %c0_6 = arith.constant 0 : index
    %c0_7 = arith.constant 0 : index
    %12 = vector.load %arg6[%c0_6, %c0_7] : memref<4x128xf32, #tpu.memory_space<vmem>>, vector<4x128xf32>
    tpu.vector_store %arg6[%c0_6, %c0_7], %11 {strides = array<i32>} : memref<4x128xf32, #tpu.memory_space<vmem>>, vector<4x128xf32>,
    %c1_i32_8 = arith.constant 1 : i32
    %c1_i32_9 = arith.constant 1 : i32
    %13 = arith.cmpi eq, %arg1, %c1_i32_9 : i32
    %14 = arith.extui %13 : i1 to i32
    %c0_i32_10 = arith.constant 0 : i32
    %15 = arith.cmpi ne, %14, %c0_i32_10 : i32
    scf.if %15 {
      %c0_11 = arith.constant 0 : index
      %c0_12 = arith.constant 0 : index
      %16 = vector.load %arg6[%c0_11, %c0_12] : memref<4x128xf32, #tpu.memory_space<vmem>>, vector<4x128xf32>
      %cst = arith.constant dense<0.000000e+00> : vector<4xf32>
      %17 = vector.multi_reduction <add>, %16, %cst [1] : vector<4x128xf32> to vector<4xf32>
      %18 = vector.shape_cast %17 : vector<4xf32> to vector<4x1xf32>
      %cst_13 = arith.constant 3.906250e-03 : f32
      %19 = vector.broadcast %cst_13 : f32 to vector<4x1xf32>
      %20 = arith.mulf %18, %19 : vector<4x1xf32>
      %c0_14 = arith.constant 0 : index
      %c0_15 = arith.constant 0 : index
      %21 = vector.load %arg3[%c0_14, %c0_15] : memref<4x32xf32, #tpu.memory_space<vmem>>, vector<4x32xf32>
      %22 = vector.broadcast %20 : vector<4x1xf32> to vector<4x32xf32>
      %23 = arith.mulf %22, %21 : vector<4x32xf32>
      %cst_16 = arith.constant dense<0.000000e+00> : vector<32xf32>
      %24 = vector.multi_reduction <add>, %23, %cst_16 [0] : vector<4x32xf32> to vector<32xf32>
      %25 = vector.shape_cast %24 : vector<32xf32> to vector<1x32xf32>
      %c0_17 = arith.constant 0 : index
      %c0_18 = arith.constant 0 : index
      %26 = vector.load %arg4[%c0_17, %c0_18] : memref<1x32xf32, #tpu.memory_space<vmem>>, vector<1x32xf32>
      %27 = arith.addf %25, %26 : vector<1x32xf32>
      %c0_19 = arith.constant 0 : index
      %c0_20 = arith.constant 0 : index
      %c0_21 = arith.constant 0 : index
      %28 = vector.load %arg5[%c0_19, %c0_20, %c0_21] : memref<1x1x32xf32, #tpu.memory_space<vmem>>, vector<1x1x32xf32>
      %29 = vector.shape_cast %28 : vector<1x1x32xf32> to vector<1x32xf32>
      %30 = vector.shape_cast %27 : vector<1x32xf32> to vector<1x1x32xf32>
      tpu.vector_store %arg5[%c0_19, %c0_20, %c0_21], %30 {strides = array<i32>} : memref<1x1x32xf32, #tpu.memory_space<vmem>>, vector<1x1x32xf32>,
    } else {
    }
    return
  }
  func.func @transform_0(%arg0: i32, %arg1: i32) -> (i32, i32, i32) {
    %c0_i32 = arith.constant 0 : i32
    %c0_i32_0 = arith.constant 0 : i32
    return %arg0, %c0_i32, %arg1 : i32, i32, i32
  }
  func.func @transform_1(%arg0: i32, %arg1: i32) -> (i32, i32) {
    %c0_i32 = arith.constant 0 : i32
    %c0_i32_0 = arith.constant 0 : i32
    %c0_i32_1 = arith.constant 0 : i32
    return %c0_i32, %c0_i32_0 : i32, i32
  }
  func.func @transform_2(%arg0: i32, %arg1: i32) -> (i32, i32) {
    %c0_i32 = arith.constant 0 : i32
    %c0_i32_0 = arith.constant 0 : i32
    %c0_i32_1 = arith.constant 0 : i32
    return %c0_i32, %c0_i32_0 : i32, i32
  }
  func.func @transform_3(%arg0: i32, %arg1: i32) -> (i32, i32, i32) {
    %c0_i32 = arith.constant 0 : i32
    %c0_i32_0 = arith.constant 0 : i32
    %c0_i32_1 = arith.constant 0 : i32
    return %arg0, %c0_i32, %c0_i32_0 : i32, i32, i32
  }
}

</mosaic_0001>

<bundles_post_ra>
// kernel: tpu_custom_call.1
= control target key start
LH: loop header
LB: loop body
LE: loop exit
PB: predicated region body
PF: predicated region fallthrough
CT: control target
= control target key end

     0   :  { %s899_s0 = inlined_call_operand.hbm [shape: f32[2,4,256], index: 0, kind: input, shape index: {}]   ;;  %s900_s1 = inlined_call_operand.hbm [shape: f32[4,32], index: 1, kind: input, shape index: {}]   ;;  %s901_s2 = inlined_call_operand.vmem [shape: f32[1,32], index: 2, kind: input, shape index: {}]   ;;  %s902_s3 = inlined_call_operand.hbm [shape: f32[2,1,32], index: 3, kind: output, shape index: {}]  }
   0x1   :  { %910 = sst [smem:[#allocation17_spill]] %s900_s1 }
   0x2   :  { %911 = sst [smem:[#allocation18_spill]] %s901_s2 }
   0x3   :  { %912 = sst [smem:[#allocation19_spill]] %s902_s3 }
   0x4   :  { %8 = vsyncpa [#allocation4], 0 }
   0x5   :  { %10 = vsyncpa [#allocation4 + $0x1], 0 }
   0x6   :  { %11 = vsyncpa [#allocation7], 0 }
   0x7   :  { %12 = vsyncpa [#allocation5], 0 }
   0x8   :  { %14 = vsyncpa [#allocation5 + $0x1], 0  ;;  %s683_s12 = smov 0   ;;  %s685_s13 = smov 0  }
   0x9   :  { %s687_s14 = smov 0   ;;  %s689_s15 = smov 0  }
   0xa   :  { %s691_s16 = smov 0   ;;  %s693_s17 = smov 0  }
   0xb   :  { %s695_s18 = smov 0   ;;  %s697_s19 = smov 0  }
   0xc   :  { %s699_s20 = smov 0   ;;  %s701_s21 = smov 0  }
   0xd   :  { %s703_s22 = smov 0  }
   0xe LB: > { %913 = sst [smem:[#allocation12_spill]] %s617_s12  ;;  %s349_s23 = sadd.s32 4294967295, %s657_s22   ;;  %s657_s22 = sphi %s703_s22, %s20_s22   ;;  %s653_s21 = sphi %s701_s21, %s945_s21   ;;  %s649_s20 = sphi %s699_s20, %s944_s20   ;;  %s645_s19 = sphi %s697_s19, %s943_s19   ;;  %s641_s18 = sphi %s695_s18, %s942_s18   ;;  %s637_s17 = sphi %s693_s17, %s941_s17   ;;  %s633_s16 = sphi %s691_s16, %s940_s16   ;;  %s629_s15 = sphi %s689_s15, %s939_s15   ;;  %s625_s14 = sphi %s687_s14, %s938_s14   ;;  %s621_s13 = sphi %s685_s13, %s937_s13   ;;  %s617_s12 = sphi %s683_s12, %s936_s12  }
   0xf   : > { %914 = sst [smem:[#allocation13_spill]] %s645_s19  ;;  %s350_s24 = sadd.s32 4294967294, %s657_s22  }
  0x10   : > { %p54_p0 = scmp.ne.s32.totalorder %s633_s16, %s629_s15  ;;  %p739_p1 = scmp.eq.s32.totalorder %s349_s23, 0 }
  0x11   : > { %s109_s26 = sadd.s32 1, %s625_s14  ;;  %p119_p2 = scmp.ne.s32.totalorder %s625_s14, %s621_s13 }
  0x12   : > { %p748_p3 = por %p739_p1, %p54_p0  ;;  %p120_p4 = scmp.eq.s32.totalorder %s349_s23, 3 }
  0x13   : > { %p125_p5 = scmp.ne.s32.totalorder %s621_s13, %s617_s12  ;;  %p126_p6 = scmp.eq.s32.totalorder %s350_s24, 3 }
  0x14   : > { %p754_p7 = por %p120_p4, %p119_p2  ;;  %p351_p8 = scmp.ge.s32.totalorder %s657_s22, 1 }
  0x15   : > { %p759_p9 = por %p126_p6, %p125_p5  ;;  %p133_p10 = scmp.lt.s32.totalorder %s657_s22, 5 }
  0x16   : > { %s917_s28 = scalar_select %p754_p7, 1, 0 }
  0x17   : > { %s919_s29 = scalar_select %p759_p9, 1, 0 }
  0x18   : > { %918 = sst [smem:[#allocation14_spill]] %s917_s28  ;;  %p764_p11 = pnand %p351_p8, %p133_p10 }
  0x19   : > { %920 = sst [smem:[#allocation15_spill]] %s919_s29  ;;  %s659_s4 = smov [#allocation6]  }
  0x1a   : > { %s146_s5 = sshll.u32 %s659_s4, 4  ;;  %p373_p12 = pneg %p764_p11  ;;  %s147_s5 = int_to_ptr.vmem [resolvable:$true] %s146_s5 }
  0x1b   : > { %s29_s6 = sadd.s32 1, %s649_s20  ;;  %s490_s7 = scalar_lea.vmem %s147_s5, 64 }
  0x1c   : > { %p374_p13 = pnand %p373_p12, %p739_p1  ;;  %p491_p2 = scmp.ne.s32.totalorder %s147_s5, %s490_s7 }
  0x1d   : > { %p498_p6 = scmp.lt.s32.totalorder %s147_s5, %s147_s5  ;;  %p499_p9 = scmp.lt.s32.totalorder %s490_s7, %s490_s7 }
  0x1e   : > { %p481_p0 = pneg %p374_p13 }
  0x1f   : > { %p500_p8 = por %p499_p9, %p498_p6 }
  0x20   : > { %p493_p4 = pnand %p491_p2, %p481_p0 }
  0x22   : > { %p494_p5 = pneg %p493_p4 }
  0x24   : > { %p501_p10 = pnand %p500_p8, %p494_p5 }
  0x26   : > { %504 = shalt.err (!%p501_p10)
}
  0x27   : > { %s922_s1 = sld [smem:[#allocation17_spill]]  ;;  %p30_p12 = scmp.ge.s32.totalorder %s29_s6, 2 }
  0x28   : > { %s32_s10 = sadd.s32 1, %s653_s21  ;;  %s41_s11 = sadd.s32 1, %s637_s17 }
  0x29   : > { %p48_p9 = scmp.ne.s32.totalorder %s637_s17, %s633_s16  ;;  %s947_s6 = smov (%p30_p12, %s29_s6), 0 }
  0x2a   : > { %923 = sst [smem:[#allocation16_spill]] %s947_s6  ;;  %s949_s10 = smov (!%p30_p12, %s32_s10), %s653_s21 }
  0x2b   : > { %s37_s15 = ssub.s32 %s649_s20, %s947_s6  ;;  %p49_p0 = scmp.eq.s32.totalorder %s657_s22, 0 }
  0x2c   : > { %p34_p2 = scmp.ge.s32.totalorder %s949_s10, 2  ;;  %p386_p4 = scmp.lt.s32.totalorder %s657_s22, 4 }
  0x2d   : > { %376 = dma.hbm_to_vmem [thread:$0]  (!%p374_p13), %s922_s1, 64, %s147_s5, [#allocation7]  }
  0x2e   : > { %p787_p5 = por %p49_p0, %p48_p9  ;;  %s160_s24 = sand.u32 1, %s637_s17  }
  0x2f   : > { %s951_s10 = smov (%p34_p2, %s949_s10), 0  ;;  %s354_s4 = sshll.u32 %s160_s24, 2 }
  0x30   : > { %s36_s5 = ssub.s32 %s653_s21, %s951_s10  ;;  %s355_s8 = sshll.u32 %s653_s21, 1 }
  0x31   : > { %s38_s7 = sor.u32 %s37_s15, %s36_s5  ;;  %p107_p13 = scmp.eq.s32.totalorder %s36_s5, 0 }
  0x32   : > { %p39_p6 = scmp.eq.s32.totalorder %s38_s7, 0  ;;  %s169_s6 = sadd.s32 %s649_s20, %s355_s8 }
  0x33   : > { %s800_s9 = scalar_select %p107_p13, %s625_s14, %s109_s26  }
  0x34   : > { %s803_s1 = scalar_select %p39_p6, %s637_s17, %s41_s11  }
  0x35   : > { %s164_s29 = scalar_lea.vmem [#allocation3], %s354_s4  ;;  %s356_s3 = sshll.u32 %s169_s6, 6 }
  0x36   : > { %s173_s12 = sshll.u32 %s164_s29, 4  ;;  %s171_s2 = scalar_lea.hbm %s899_s0, %s356_s3  ;;  %s174_s12 = int_to_ptr.vmem [resolvable:$true] %s173_s12 }
  0x37   : > { %p813_p8 = pnand %p386_p4, %p787_p5  ;;  %s161_s26 = scalar_lea.sflag [#allocation4], %s160_s24 }
  0x38   : > { %s518_s11 = scalar_lea.vmem %s174_s12, 64  ;;  %s660_s29 = smov [#allocation3]  }
  0x39   : > { %p507_p10 = pneg %p813_p8  ;;  %p519_p12 = scmp.ne.s32.totalorder %s174_s12, %s518_s11 }
  0x3a   : > { %s523_s6 = sshll.u32 %s660_s29, 4  ;;  %s524_s6 = int_to_ptr.vmem [resolvable:$false] %s523_s6 }
  0x3b   : > { %p521_p9 = pnand %p519_p12, %p507_p10  ;;  %s525_s4 = scalar_lea.vmem %s524_s6, 128 }
  0x3c   : > { %p526_p2 = scmp.lt.s32.totalorder %s174_s12, %s524_s6  ;;  %p527_p13 = scmp.lt.s32.totalorder %s525_s4, %s518_s11 }
  0x3d   : > { %p522_p0 = pneg %p521_p9 }
  0x3e   : > { %p528_p6 = por %p527_p13, %p526_p2 }
  0x40   : > { %p529_p7 = pnand %p528_p6, %p522_p0 }
  0x42   : > { %532 = shalt.err (!%p529_p7)
}
  0x43   : > { %380 = dma.hbm_to_vmem [thread:$0]  (!%p813_p8), %s171_s2, 64, %s174_s12, %s161_s26  }
  0x44   : > { %182 = sbr.rel (%p764_p11) target bundleno = 288 (0x120), region = 32  ;;  %s184_s3 = sand.u32 (!%p764_p11), 1, %s633_s16  }
  0x45   : > { %s358_s19 = sshll.u32 (!%p764_p11), %s184_s3, 2  ;;  %s185_s28 = scalar_lea.sflag (!%p764_p11), [#allocation4], %s184_s3 }
  0x46   : > { %s188_s23 = scalar_lea.vmem (!%p764_p11), [#allocation3], %s358_s19 }
  0x49   : > { %604 = dma.done.wait (%p748_p3), %s185_s28, 64  }
  0x4a   : > { %606 = vsyncadd (%p748_p3), %s185_s28, 4294967232 }
  0x4b   : > { %608 = dma.done.wait (%p739_p1), [#allocation7], 64  }
  0x4c   : > { %610 = vsyncadd (%p739_p1), [#allocation7], 4294967232  ;;  %s212_s2 = sand.u32 1, %s621_s13   ;;  %p360_p7 = scmp.ne.s32.totalorder %s641_s18, 0 }
  0x4d   : > { %s835_s12 = scalar_lea.vmem [#allocation8], %s212_s2 }
  0x4e   : > { %217 = sbr.rel (%p360_p7) target bundleno = 85 (0x55), region = 44 }
  0x53   : > { %v661_v0 = vmov 0.0  }
  0x54   : > { %218 = vst [vmem:[#allocation2] sm:$0xf] %v661_v0 }
  0x55 PF: > { %v220_v2 = vld [vmem:[%s188_s23] sm:$0xf]  ;;  %p361_p3 = scmp.ne.s32.totalorder %s641_s18, 1 }
  0x56   : > { %s926_s18 = sld [smem:[#allocation18_spill]] (!%p361_p3) }
  0x5a   : > { %226 = sbr.rel (%p361_p3) target bundleno = 261 (0x105), region = 48 }
  0x5b   : > { %v219_v1 = vld [vmem:[#allocation2] sm:$0xf] }
  0x5c   : > { %v221_v3 = vadd.f32 %v220_v2, %v219_v1 }
  0x5e   : > { %222 = vst [vmem:[#allocation2] sm:$0xf] %v221_v3 }
  0x5f   : > { %vm228_vm0 = vcmask 1043456   ;;  %v233_v7 = vld [vmem:[#allocation6] sm:$0xf]  ;;  %vm235_vm1 = vcmask 257024   ;;  %v243_v16 = vld [vmem:[%s926_s18] sm:$0x1] }
  0x60   : > { %vm245_vm2 = vcmask 253952  }
  0x65   : > { %v227_v4 = vld [vmem:[#allocation2] sm:$0xf] }
  0x66   : > { %v229_v5 = vsel %vm228_vm0, %v227_v4, 0.0 }
  0x67   : > { %230 = vadd.xlane.f32.xlu0 %v229_v5 }
  0xf0   : > { %v231_v6 = vpop.xlane.xlu0 %230 }
  0xf1   : > { %v232_v8 = vmul.f32 0.00390625, %v231_v6 }
  0xf3   : > { %v234_v9 = vmul.f32 %v233_v7, %v232_v8 }
  0xf5   : > { %v236_v10 = vsel %vm235_vm1, %v234_v9, 0.0 }
  0xf6   : > { %v237_v11 = vrot.slane %v236_v10, 4 }
  0xf8   : > { %v238_v12 = vadd.f32 %v237_v11, %v236_v10 }
  0xfa   : > { %v239_v13 = vrot.slane %v238_v12, 2 }
  0xfc   : > { %v240_v14 = vadd.f32 %v239_v13, %v238_v12 }
  0xfe   : > { %v241_v15 = vrot.slane %v240_v14, 1 }
 0x100   : > { %v242_v17 = vadd.f32 %v241_v15, %v240_v14 }
 0x102   : > { %v244_v18 = vadd.f32 %v243_v16, %v242_v17 }
 0x104   : > { %246 = vst.msk [vmem:[%s835_s12] sm:$0x1] %vm245_vm2, %v244_v18 }
 0x105 PF: > { %s927_s30 = sld [smem:[#allocation13_spill]]  ;;  %s260_s29 = sshll.u32 %s835_s12, 4  ;;  %s261_s29 = int_to_ptr.vmem [resolvable:$true] %s260_s29 }
 0x106   : > { %s928_s24 = sld [smem:[#allocation14_spill]]  ;;  %s248_s6 = scalar_lea.sflag [#allocation5], %s212_s2 }
 0x107   : > { %s929_s15 = sld [smem:[#allocation19_spill]]  ;;  %s533_s4 = scalar_lea.vmem %s261_s29, 16 }
 0x108   : > { %p534_p1 = scmp.ne.s32.totalorder %s261_s29, %s533_s4  ;;  %s662_s3 = smov [#allocation8]  }
 0x109   : > { %s537_s19 = sshll.u32 %s662_s3, 4  ;;  %s538_s19 = int_to_ptr.vmem [resolvable:$false] %s537_s19 }
 0x10a   : > { %s539_s28 = scalar_lea.vmem %s538_s19, 32  ;;  %p540_p8 = scmp.lt.s32.totalorder %s261_s29, %s538_s19 }
 0x10b   : > { %s362_s5 = sshll.u32 %s927_s30, 4  ;;  %p541_p10 = scmp.lt.s32.totalorder %s539_s28, %s533_s4 }
 0x10c   : > { %p931_p11 = scmp.ne.s32.totalorder %s928_s24, 0 }
 0x10d   : > { %s930_s26 = smov %s929_s15  ;;  %s258_s11 = scalar_lea.hbm %s929_s15, %s362_s5 }
 0x10e   : > { %p535_p4 = pnand %p534_p1, %p931_p11  ;;  %p542_p12 = por %p541_p10, %p540_p8 }
 0x110   : > { %p536_p5 = pneg %p535_p4 }
 0x112   : > { %p543_p9 = pnand %p542_p12, %p536_p5 }
 0x114   : > { %546 = shalt.err (!%p543_p9)
}
 0x115   : > { %s547_s23 = scalar_lea.hbm %s258_s11, 16  ;;  %s551_s25 = scalar_lea.hbm %s930_s26, 32 }
 0x116   : > { %p548_p0 = scmp.ne.s32.totalorder %s258_s11, %s547_s23  ;;  %p552_p6 = scmp.lt.s32.totalorder %s258_s11, %s930_s26 }
 0x117   : > { %p553_p7 = scmp.lt.s32.totalorder %s551_s25, %s547_s23 }
 0x118   : > { %p549_p2 = pnand %p548_p0, %p931_p11 }
 0x119   : > { %p554_p3 = por %p553_p7, %p552_p6 }
 0x11a   : > { %p550_p13 = pneg %p549_p2 }
 0x11c   : > { %p555_p1 = pnand %p554_p3, %p550_p13 }
 0x11e   : > { %558 = shalt.err (!%p555_p1)
}
 0x11f   : > { %371 = dma.vmem_to_hbm [thread:$0]  (%p931_p11), %s261_s29, 16, %s258_s11, %s248_s6  }
 0x120 PF: > { %s932_s30 = sld [smem:[#allocation12_spill]]  ;;  %p388_p4 = scmp.ge.s32.totalorder %s657_s22, 2 }
 0x121   : > { %s933_s5 = sld [smem:[#allocation15_spill]] }
 0x126   : > { %s272_s7 = sand.u32 1, %s932_s30  }
 0x127   : > { %p934_p5 = scmp.ne.s32.totalorder %s933_s5, 0  ;;  %s273_s8 = scalar_lea.sflag [#allocation5], %s272_s7 }
 0x129   : > { %p382_p8 = pnand %p388_p4, %p934_p5 }
 0x12b   : > { %p383_p10 = pneg %p382_p8 }
 0x12d   : > { %612 = dma.done.wait (%p383_p10), %s273_s8, 16  }
 0x12e   : > { %614 = vsyncadd (%p383_p10), %s273_s8, 4294967280  ;;  %s20_s22 = sadd.s32 1, %s657_s22   ;;  %s935_s24 = sld [smem:[#allocation16_spill]] }
 0x12f   : > { %p17_p12 = scmp.ge.s32.totalorder %s20_s22, 6   ;;  %s936_s12 = smov %s621_s13 }
 0x130   : > { %s937_s13 = smov %s625_s14  ;;  %s938_s14 = smov %s800_s9 }
 0x131   : > { %s939_s15 = smov %s633_s16  ;;  %s940_s16 = smov %s637_s17 }
 0x132   : > { %s941_s17 = smov %s803_s1  ;;  %s942_s18 = smov %s649_s20 }
 0x133   : > { %s943_s19 = smov %s653_s21  ;;  %s945_s21 = smov %s951_s10 }
 0x134   : > { %s944_s20 = smov %s935_s24  ;;  %19 = sbr.rel (!%p17_p12) target bundleno = 14 (0xe), region = 89 }
 0x139   :  { %277 = vsyncpa [#allocation4], 1 }
 0x13a   :  { %279 = vsyncpa [#allocation4 + $0x1], 1 }
 0x13b   :  { %280 = vsyncpa [#allocation7], 1 }
 0x13c   :  { %281 = vsyncpa [#allocation5], 1 }
 0x13d   :  { %283 = vsyncpa [#allocation5 + $0x1], 1 }

</bundles_post_ra>
